<compile_context>
chip_gen: v7x
topology: tpu7x:2x2x1
jax: 0.10.0
libtpu: 0.0.40
codegen_flags: <defaults>
</compile_context>

<pallas_src>
import functools

import jax
import jax.numpy as jnp
from jax.experimental import pallas as pl
from jax.experimental.pallas import tpu as pltpu

# Logical (PyTorch) dims and lane-padded dims.
D_IN, H1, H2, D_OUT = 225, 200, 200, 221
D_IN_P, H1_P, H2_P, D_OUT_P = 256, 256, 256, 256


def onion_kernel(x_ref, w1_ref, b1_ref, w2_ref, b2_ref, w3_ref, b3_ref, o_ref):
    # Layer 1: (tb, 256)bf16 @ (256, 256)bf16 -> f32, + bias, ReLU
    h = jnp.dot(x_ref[...], w1_ref[...], preferred_element_type=jnp.float32)
    h = jnp.maximum(h + b1_ref[...], 0.0)
    # Layer 2 (activations re-cast to bf16 to keep the full bf16 MXU datapath)
    h = jnp.dot(h.astype(w2_ref.dtype), w2_ref[...],
                preferred_element_type=jnp.float32)
    h = jnp.maximum(h + b2_ref[...], 0.0)
    # Layer 3
    h = jnp.dot(h.astype(w3_ref.dtype), w3_ref[...],
                preferred_element_type=jnp.float32)
    h = jnp.maximum(h + b3_ref[...], 0.0)
    o_ref[...] = h.astype(o_ref.dtype)


def _pad2d(a, rows, cols):
    r, c = a.shape
    return jnp.pad(a, ((0, rows - r), (0, cols - c)))


@functools.partial(jax.jit, static_argnames=("tb",))
def onion_net(x, params, *, tb=256):
    """x: (B, 225) float32. params: transposed (in, out) weights + (1, out) biases."""
    B, d_in = x.shape
    assert d_in == D_IN
    assert tb % 8 == 0, "batch tile must be a multiple of 8 (f32 sublanes)"

    # --- pad batch up to a multiple of tb (zero rows, sliced off at the end) ---
    n_steps = pl.cdiv(B, tb)
    Bp = n_steps * tb
    x_p = jnp.pad(x, ((0, Bp - B), (0, D_IN_P - D_IN))).astype(jnp.bfloat16)

    # --- lane-pad + bf16-cast weights (zero padding keeps results exact) ---
    w1 = _pad2d(params["w1"], D_IN_P, H1_P).astype(jnp.bfloat16)   # (256, 256)
    w2 = _pad2d(params["w2"], H1_P, H2_P).astype(jnp.bfloat16)     # (256, 256)
    w3 = _pad2d(params["w3"], H2_P, D_OUT_P).astype(jnp.bfloat16)  # (256, 256)
    b1 = _pad2d(params["b1"], 1, H1_P).astype(jnp.float32)         # (1, 256)
    b2 = _pad2d(params["b2"], 1, H2_P).astype(jnp.float32)
    b3 = _pad2d(params["b3"], 1, D_OUT_P).astype(jnp.float32)

    x_map = lambda i: (i, 0)
    const_map = lambda i: (0, 0)  # constant index: kept resident across steps

    flops = 2 * B * (D_IN * H1 + H1 * H2 + H2 * D_OUT)
    bytes_accessed = (
        Bp * D_IN_P * 2 + Bp * D_OUT_P * 4            # x in (bf16), out (f32)
        + (D_IN_P * H1_P + H1_P * H2_P + H2_P * D_OUT_P) * 2  # weights (bf16)
        + (H1_P + H2_P + D_OUT_P) * 4                 # biases (f32)
    )

    out_p = pl.pallas_call(
        onion_kernel,
        out_shape=jax.ShapeDtypeStruct((Bp, D_OUT_P), jnp.float32),
        grid=(n_steps,),
        in_specs=[
            pl.BlockSpec((tb, D_IN_P), x_map),
            pl.BlockSpec((D_IN_P, H1_P), const_map),
            pl.BlockSpec((1, H1_P), const_map),
            pl.BlockSpec((H1_P, H2_P), const_map),
            pl.BlockSpec((1, H2_P), const_map),
            pl.BlockSpec((H2_P, D_OUT_P), const_map),
            pl.BlockSpec((1, D_OUT_P), const_map),
        ],
        out_specs=pl.BlockSpec((tb, D_OUT_P), x_map),
        compiler_params=pltpu.CompilerParams(
            dimension_semantics=("parallel",),
            vmem_limit_bytes=32 * 1024 * 1024,
        ),
        cost_estimate=pl.CostEstimate(
            flops=flops, transcendentals=0, bytes_accessed=bytes_accessed
        ),
    )(x_p, w1, b1, w2, b2, w3, b3)

    # Strip batch and lane padding.
    return out_p[:B, :D_OUT]


def init_params(key):
    """Deterministic init mirroring PyTorch Linear default U(-1/sqrt(fan_in), ...).

    Weights are stored already transposed to (in_features, out_features).
    """
    dims = [(D_IN, H1), (H1, H2), (H2, D_OUT)]
    params = {}
    for idx, (fan_in, fan_out) in enumerate(dims, start=1):
        key, kw, kb = jax.random.split(key, 3)
        bound = 1.0 / jnp.sqrt(jnp.float32(fan_in))
        params[f"w{idx}"] = jax.random.uniform(
            kw, (fan_in, fan_out), jnp.float32, -bound, bound)
        params[f"b{idx}"] = jax.random.uniform(
            kb, (1, fan_out), jnp.float32, -bound, bound)
    return params


def onion_ref(x, params):
    """Reference mirroring the kernel's bf16-in / f32-accumulate numerics."""
    def layer(a, w, b):
        y = jnp.dot(a.astype(jnp.bfloat16), w.astype(jnp.bfloat16),
                    preferred_element_type=jnp.float32) + b
        return jnp.maximum(y, 0.0)

    h = layer(x, params["w1"], params["b1"])
    h = layer(h, params["w2"], params["b2"])
    h = layer(h, params["w3"], params["b3"])
    return h


if __name__ == "__main__":
    key = jax.random.PRNGKey(0)
    kp, kx = jax.random.split(key)
    params = init_params(kp)

    # Small demo shape; B deliberately NOT a multiple of tb to exercise the
    # padding path, and > tb so the grid has multiple (megacore-shardable) steps.
    B = 200
    x = jax.random.normal(kx, (B, D_IN), jnp.float32)

    out = jax.block_until_ready(onion_net(x, params, tb=128))

    ref = onion_ref(x, params)
    assert out.shape == (B, D_OUT)
    assert jnp.allclose(out, ref, atol=1e-3, rtol=1e-3), "mismatch vs reference"

    print("KERNEL_OK")
</pallas_src>

<mosaic_0001>
module attributes {stable_mosaic.version = 11 : i64} {
  func.func @onion_kernel(%arg0: i32, %arg1: memref<128x256xbf16, #tpu.memory_space<vmem>>, %arg2: memref<256x256xbf16, #tpu.memory_space<vmem>>, %arg3: memref<1x256xf32, #tpu.memory_space<vmem>>, %arg4: memref<256x256xbf16, #tpu.memory_space<vmem>>, %arg5: memref<1x256xf32, #tpu.memory_space<vmem>>, %arg6: memref<256x256xbf16, #tpu.memory_space<vmem>>, %arg7: memref<1x256xf32, #tpu.memory_space<vmem>>, %arg8: memref<128x256xf32, #tpu.memory_space<vmem>>) attributes {dimension_semantics = [#tpu.dimension_semantics<parallel>], iteration_bounds = array<i64: 2>, scalar_prefetch = 0 : i64, scratch_operands = 0 : i64, tpu.core_type = #tpu.core_type<tc>, window_params = [{transform_indices = @transform_0, window_bounds = array<i64: 128, 256>}, {pipeline_mode = #tpu.pipeline_mode<synchronous>, transform_indices = @transform_1, window_bounds = array<i64: 256, 256>}, {pipeline_mode = #tpu.pipeline_mode<synchronous>, transform_indices = @transform_2, window_bounds = array<i64: 1, 256>}, {pipeline_mode = #tpu.pipeline_mode<synchronous>, transform_indices = @transform_3, window_bounds = array<i64: 256, 256>}, {pipeline_mode = #tpu.pipeline_mode<synchronous>, transform_indices = @transform_4, window_bounds = array<i64: 1, 256>}, {pipeline_mode = #tpu.pipeline_mode<synchronous>, transform_indices = @transform_5, window_bounds = array<i64: 256, 256>}, {pipeline_mode = #tpu.pipeline_mode<synchronous>, transform_indices = @transform_6, window_bounds = array<i64: 1, 256>}, {transform_indices = @transform_7, window_bounds = array<i64: 128, 256>}]} {
    %c0 = arith.constant 0 : index
    %c0_0 = arith.constant 0 : index
    %0 = vector.load %arg1[%c0, %c0_0] : memref<128x256xbf16, #tpu.memory_space<vmem>>, vector<128x256xbf16>
    %c0_1 = arith.constant 0 : index
    %c0_2 = arith.constant 0 : index
    %1 = vector.load %arg2[%c0_1, %c0_2] : memref<256x256xbf16, #tpu.memory_space<vmem>>, vector<256x256xbf16>
    %cst = arith.constant dense<0.000000e+00> : vector<128x256xf32>
    %2 = tpu.matmul %0, %1, %cst {dimension_numbers = #tpu.dot_dimension_numbers<[1], [0], [0], [1], [0, 0, 1, 1], [], []>} : vector<128x256xbf16>, vector<256x256xbf16>, vector<128x256xf32> -> vector<128x256xf32>
    %c0_3 = arith.constant 0 : index
    %c0_4 = arith.constant 0 : index
    %3 = vector.load %arg3[%c0_3, %c0_4] : memref<1x256xf32, #tpu.memory_space<vmem>>, vector<1x256xf32>
    %4 = vector.broadcast %3 : vector<1x256xf32> to vector<128x256xf32>
    %5 = arith.addf %2, %4 : vector<128x256xf32>
    %cst_5 = arith.constant 0.000000e+00 : f32
    %6 = vector.broadcast %cst_5 : f32 to vector<128x256xf32>
    %7 = arith.maximumf %5, %6 : vector<128x256xf32>
    %8 = arith.truncf %7 : vector<128x256xf32> to vector<128x256xbf16>
    %c0_6 = arith.constant 0 : index
    %c0_7 = arith.constant 0 : index
    %9 = vector.load %arg4[%c0_6, %c0_7] : memref<256x256xbf16, #tpu.memory_space<vmem>>, vector<256x256xbf16>
    %cst_8 = arith.constant dense<0.000000e+00> : vector<128x256xf32>
    %10 = tpu.matmul %8, %9, %cst_8 {dimension_numbers = #tpu.dot_dimension_numbers<[1], [0], [0], [1], [0, 0, 1, 1], [], []>} : vector<128x256xbf16>, vector<256x256xbf16>, vector<128x256xf32> -> vector<128x256xf32>
    %c0_9 = arith.constant 0 : index
    %c0_10 = arith.constant 0 : index
    %11 = vector.load %arg5[%c0_9, %c0_10] : memref<1x256xf32, #tpu.memory_space<vmem>>, vector<1x256xf32>
    %12 = vector.broadcast %11 : vector<1x256xf32> to vector<128x256xf32>
    %13 = arith.addf %10, %12 : vector<128x256xf32>
    %cst_11 = arith.constant 0.000000e+00 : f32
    %14 = vector.broadcast %cst_11 : f32 to vector<128x256xf32>
    %15 = arith.maximumf %13, %14 : vector<128x256xf32>
    %16 = arith.truncf %15 : vector<128x256xf32> to vector<128x256xbf16>
    %c0_12 = arith.constant 0 : index
    %c0_13 = arith.constant 0 : index
    %17 = vector.load %arg6[%c0_12, %c0_13] : memref<256x256xbf16, #tpu.memory_space<vmem>>, vector<256x256xbf16>
    %cst_14 = arith.constant dense<0.000000e+00> : vector<128x256xf32>
    %18 = tpu.matmul %16, %17, %cst_14 {dimension_numbers = #tpu.dot_dimension_numbers<[1], [0], [0], [1], [0, 0, 1, 1], [], []>} : vector<128x256xbf16>, vector<256x256xbf16>, vector<128x256xf32> -> vector<128x256xf32>
    %c0_15 = arith.constant 0 : index
    %c0_16 = arith.constant 0 : index
    %19 = vector.load %arg7[%c0_15, %c0_16] : memref<1x256xf32, #tpu.memory_space<vmem>>, vector<1x256xf32>
    %20 = vector.broadcast %19 : vector<1x256xf32> to vector<128x256xf32>
    %21 = arith.addf %18, %20 : vector<128x256xf32>
    %cst_17 = arith.constant 0.000000e+00 : f32
    %22 = vector.broadcast %cst_17 : f32 to vector<128x256xf32>
    %23 = arith.maximumf %21, %22 : vector<128x256xf32>
    %c0_18 = arith.constant 0 : index
    %c0_19 = arith.constant 0 : index
    %24 = vector.load %arg8[%c0_18, %c0_19] : memref<128x256xf32, #tpu.memory_space<vmem>>, vector<128x256xf32>
    tpu.vector_store %arg8[%c0_18, %c0_19], %23 {strides = array<i32>} : memref<128x256xf32, #tpu.memory_space<vmem>>, vector<128x256xf32>,
    return
  }
  func.func @transform_0(%arg0: i32) -> (i32, i32) {
    %c0_i32 = arith.constant 0 : i32
    %c0_i32_0 = arith.constant 0 : i32
    return %arg0, %c0_i32 : i32, i32
  }
  func.func @transform_1(%arg0: i32) -> (i32, i32) {
    %c0_i32 = arith.constant 0 : i32
    %c0_i32_0 = arith.constant 0 : i32
    %c0_i32_1 = arith.constant 0 : i32
    return %c0_i32, %c0_i32_0 : i32, i32
  }
  func.func @transform_2(%arg0: i32) -> (i32, i32) {
    %c0_i32 = arith.constant 0 : i32
    %c0_i32_0 = arith.constant 0 : i32
    %c0_i32_1 = arith.constant 0 : i32
    return %c0_i32, %c0_i32_0 : i32, i32
  }
  func.func @transform_3(%arg0: i32) -> (i32, i32) {
    %c0_i32 = arith.constant 0 : i32
    %c0_i32_0 = arith.constant 0 : i32
    %c0_i32_1 = arith.constant 0 : i32
    return %c0_i32, %c0_i32_0 : i32, i32
  }
  func.func @transform_4(%arg0: i32) -> (i32, i32) {
    %c0_i32 = arith.constant 0 : i32
    %c0_i32_0 = arith.constant 0 : i32
    %c0_i32_1 = arith.constant 0 : i32
    return %c0_i32, %c0_i32_0 : i32, i32
  }
  func.func @transform_5(%arg0: i32) -> (i32, i32) {
    %c0_i32 = arith.constant 0 : i32
    %c0_i32_0 = arith.constant 0 : i32
    %c0_i32_1 = arith.constant 0 : i32
    return %c0_i32, %c0_i32_0 : i32, i32
  }
  func.func @transform_6(%arg0: i32) -> (i32, i32) {
    %c0_i32 = arith.constant 0 : i32
    %c0_i32_0 = arith.constant 0 : i32
    %c0_i32_1 = arith.constant 0 : i32
    return %c0_i32, %c0_i32_0 : i32, i32
  }
  func.func @transform_7(%arg0: i32) -> (i32, i32) {
    %c0_i32 = arith.constant 0 : i32
    %c0_i32_0 = arith.constant 0 : i32
    return %arg0, %c0_i32 : i32, i32
  }
}

</mosaic_0001>

<bundles_post_ra>
// kernel: onion_net.1
= control target key start
LH: loop header
LB: loop body
LE: loop exit
PB: predicated region body
PF: predicated region fallthrough
CT: control target
= control target key end

     0   :  { %s1935_s24 = smov 0   ;;  %s2531_s0 = inlined_call_operand.vmem [shape: bf16[256,256], index: 0, kind: input, shape index: {}]   ;;  %s2532_s1 = inlined_call_operand.vmem [shape: bf16[256,256], index: 1, kind: input, shape index: {}]   ;;  %s2533_s2 = inlined_call_operand.vmem [shape: f32[1,256], index: 2, kind: input, shape index: {}]   ;;  %s2534_s3 = inlined_call_operand.vmem [shape: bf16[256,256], index: 3, kind: input, shape index: {}]   ;;  %s2535_s4 = inlined_call_operand.vmem [shape: f32[1,256], index: 4, kind: input, shape index: {}]   ;;  %s2536_s5 = inlined_call_operand.vmem [shape: bf16[256,256], index: 5, kind: input, shape index: {}]   ;;  %s2537_s6 = inlined_call_operand.vmem [shape: f32[1,256], index: 6, kind: input, shape index: {}]   ;;  %s2538_s7 = inlined_call_operand.vmem [shape: f32[256,256], index: 7, kind: output, shape index: {}]  }
   0x1 LB: > { %s1552_s25 = sadd.s32 4294967295, %s1893_s24   ;;  %p1556_p0 = scmp.ge.s32.totalorder %s1893_s24, 1  ;;  %s1893_s24 = sphi %s1935_s24, %s17_s24  }
   0x2   : > { %p239_p1 = scmp.lt.s32.totalorder %s1893_s24, 3 }
   0x4   : > { %p240_p2 = pnand %p1556_p0, %p239_p1 }
   0x5   : > { %v1719_v0 = vld [vmem:[%s2532_s1 + $0x4] ss:$8 sps:$4 sm:$0xff] (!%p240_p2)   ;;  %v1721_v1 = vld [vmem:[%s2532_s1] ss:$8 sps:$4 sm:$0xff] (!%p240_p2)   ;;  %v1722_v2 = vld [vmem:[%s2532_s1 + $0x14] ss:$8 sps:$4 sm:$0xff] (!%p240_p2)  }
   0x6   : > { %243 = sbr.rel (%p240_p2) target bundleno = 790 (0x316), region = 48  ;;  %587 = vmatprep.subr.bf16.mxu0 (!%p240_p2), %v1719_v0  ;;  %v1724_v3 = vld [vmem:[%s2532_s1 + $0x10] ss:$8 sps:$4 sm:$0xff] (!%p240_p2)   ;;  %v1725_v4 = vld [vmem:[%s2532_s1 + $0x24] ss:$8 sps:$4 sm:$0xff] (!%p240_p2)   ;;  %s1557_s13 = sshll.u32 (!%p240_p2), %s1552_s25, 4 }
   0x7   : > { %588 = vmatpush1.bf16.msra.mxu0 (!%p240_p2), %v1721_v1  ;;  %v1727_v5 = vld [vmem:[%s2532_s1 + $0x20] ss:$8 sps:$4 sm:$0xff] (!%p240_p2)   ;;  %v1728_v6 = vld [vmem:[%s2532_s1 + $0x34] ss:$8 sps:$4 sm:$0xff] (!%p240_p2)   ;;  %p274_p3 = scmp.lt.s32.totalorder (!%p240_p2), %s1557_s13, 31 }
   0x8   : > { %589 = vmatprep.subr.bf16.mxu0 (!%p240_p2), %v1722_v2  ;;  %v1730_v7 = vld [vmem:[%s2532_s1 + $0x30] ss:$8 sps:$4 sm:$0xff] (!%p240_p2)   ;;  %v1731_v8 = vld [vmem:[%s2532_s1 + $0x44] ss:$8 sps:$4 sm:$0xff] (!%p240_p2)   ;;  %v1733_v9 = vld [vmem:[%s2532_s1 + $0x40] ss:$8 sps:$4 sm:$0xff] (!%p240_p2)  }
   0x9   : > { %v1734_v10 = vld [vmem:[%s2532_s1 + $0x54] ss:$8 sps:$4 sm:$0xff] (!%p240_p2)   ;;  %v1736_v11 = vld [vmem:[%s2532_s1 + $0x50] ss:$8 sps:$4 sm:$0xff] (!%p240_p2)   ;;  %v1737_v12 = vld [vmem:[%s2532_s1 + $0x64] ss:$8 sps:$4 sm:$0xff] (!%p240_p2)  }
   0xa   : > { %v1739_v14 = vld [vmem:[%s2532_s1 + $0x60] ss:$8 sps:$4 sm:$0xff] (!%p240_p2)   ;;  %v1740_v15 = vld [vmem:[%s2532_s1 + $0x74] ss:$8 sps:$4 sm:$0xff] (!%p240_p2)   ;;  %v1742_v16 = vld [vmem:[%s2532_s1 + $0x70] ss:$8 sps:$4 sm:$0xff] (!%p240_p2)  }
   0xb   : > { %590 = vmatpush1.bf16.msra.mxu0 (!%p240_p2), %v1724_v3  ;;  %v1743_v17 = vld [vmem:[%s2532_s1 + $0x84] ss:$8 sps:$4 sm:$0xff] (!%p240_p2)   ;;  %v1745_v18 = vld [vmem:[%s2532_s1 + $0x80] ss:$8 sps:$4 sm:$0xff] (!%p240_p2)   ;;  %v1746_v19 = vld [vmem:[%s2532_s1 + $0x94] ss:$8 sps:$4 sm:$0xff] (!%p240_p2)  }
   0xc   : > { %591 = vmatprep.subr.bf16.mxu0 (!%p240_p2), %v1725_v4  ;;  %v1791_v20 = vld [vmem:[%s2534_s3 + $0x4] ss:$8 sps:$4 sm:$0xff] (!%p240_p2)   ;;  %v1793_v21 = vld [vmem:[%s2534_s3] ss:$8 sps:$4 sm:$0xff] (!%p240_p2)   ;;  %v1748_v22 = vld [vmem:[%s2532_s1 + $0x90] ss:$8 sps:$4 sm:$0xff] (!%p240_p2)  }
   0xd   : > { %s2540_s13 = smov (!%p274_p3, %s1557_s13), 31  ;;  %952 = vmatprep.subr.bf16.mxu1 %v1791_v20  ;;  %v1794_v23 = vld [vmem:[%s2534_s3 + $0x14] ss:$8 sps:$4 sm:$0xff]   ;;  %v1749_v24 = vld [vmem:[%s2532_s1 + $0xa4] ss:$8 sps:$4 sm:$0xff]  }
   0xe   : > { %s1677_s27 = sshll.u32 %s2540_s13, 3  ;;  %953 = vmatpush1.bf16.msra.mxu1 %v1793_v21  ;;  %v1796_v25 = vld [vmem:[%s2534_s3 + $0x10] ss:$8 sps:$4 sm:$0xff]   ;;  %v1797_v26 = vld [vmem:[%s2534_s3 + $0x24] ss:$8 sps:$4 sm:$0xff]   ;;  %s1678_s21 = sshll.u32 %s2540_s13, 4 }
   0xf   : > { %592 = vmatpush1.bf16.msra.mxu0 %v1727_v5  ;;  %s1985_s9 = scalar_lea.vmem %s2531_s0, %s1677_s27  ;;  %954 = vmatprep.subr.bf16.mxu1 %v1794_v23  ;;  %v1751_v27 = vld [vmem:[%s2532_s1 + $0xa0] ss:$8 sps:$4 sm:$0xff]   ;;  %v1752_v28 = vld [vmem:[%s2532_s1 + $0xb4] ss:$8 sps:$4 sm:$0xff]   ;;  %v1754_v31 = vld [vmem:[%s2532_s1 + $0xb0] ss:$8 sps:$4 sm:$0xff]   ;;  %s2463_s25 = scalar_lea.vmem %s2538_s7, %s1678_s21 }
  0x10   : > { %593 = vmatprep.subr.bf16.mxu0 %v1728_v6  ;;  %v1769_v13 = vld [vmem:[%s1985_s9 + $0x4] ss:$8 sps:$4 sm:$0xff]   ;;  %v1799_v29 = vld [vmem:[%s2534_s3 + $0x20] ss:$8 sps:$4 sm:$0xff]   ;;  %v1800_v30 = vld [vmem:[%s2534_s3 + $0x34] ss:$8 sps:$4 sm:$0xff]  }
  0x11   : > { %619 = vmatprep.mubr.bf16.mxu0 %v1769_v13  ;;  %v1755_v32 = vld [vmem:[%s2532_s1 + $0xc4] ss:$8 sps:$4 sm:$0xff]   ;;  %v1802_v33 = vld [vmem:[%s2534_s3 + $0x30] ss:$8 sps:$4 sm:$0xff]   ;;  %v1757_v35 = vld [vmem:[%s2532_s1 + $0xc0] ss:$8 sps:$4 sm:$0xff]  }
  0x12   : > { %955 = vmatpush1.bf16.msra.mxu1 %v1796_v25  ;;  %v1803_v34 = vld [vmem:[%s2534_s3 + $0x44] ss:$8 sps:$4 sm:$0xff]   ;;  %v1758_v36 = vld [vmem:[%s2532_s1 + $0xd4] ss:$8 sps:$4 sm:$0xff]   ;;  %v1805_v37 = vld [vmem:[%s2534_s3 + $0x40] ss:$8 sps:$4 sm:$0xff]  }
  0x13   : > { %594 = vmatpush1.bf16.msra.mxu0 %v1730_v7  ;;  %956 = vmatprep.subr.bf16.mxu1 %v1797_v26  ;;  %v1806_v38 = vld [vmem:[%s2534_s3 + $0x54] ss:$8 sps:$4 sm:$0xff]   ;;  %v1760_v39 = vld [vmem:[%s2532_s1 + $0xd0] ss:$8 sps:$4 sm:$0xff]   ;;  %v1761_v40 = vld [vmem:[%s2532_s1 + $0xe4] ss:$8 sps:$4 sm:$0xff]  }
  0x14   : > { %595 = vmatprep.subr.bf16.mxu0 %v1731_v8  ;;  %v1808_v41 = vld [vmem:[%s2534_s3 + $0x50] ss:$8 sps:$4 sm:$0xff]   ;;  %v1809_v42 = vld [vmem:[%s2534_s3 + $0x64] ss:$8 sps:$4 sm:$0xff]   ;;  %v1763_v43 = vld [vmem:[%s2532_s1 + $0xe0] ss:$8 sps:$4 sm:$0xff]  }
  0x15   : > { %v1811_v44 = vld [vmem:[%s2534_s3 + $0x60] ss:$8 sps:$4 sm:$0xff]   ;;  %v1764_v45 = vld [vmem:[%s2532_s1 + $0xf4] ss:$8 sps:$4 sm:$0xff]   ;;  %v1766_v47 = vld [vmem:[%s2532_s1 + $0xf0] ss:$8 sps:$4 sm:$0xff]  }
  0x16   : > { %957 = vmatpush1.bf16.msra.mxu1 %v1799_v29  ;;  %v1812_v46 = vld [vmem:[%s2534_s3 + $0x74] ss:$8 sps:$4 sm:$0xff]   ;;  %v1814_v48 = vld [vmem:[%s2534_s3 + $0x70] ss:$8 sps:$4 sm:$0xff]   ;;  %v1815_v49 = vld [vmem:[%s2534_s3 + $0x84] ss:$8 sps:$4 sm:$0xff]  }
  0x17   : > { %596 = vmatpush1.bf16.msra.mxu0 %v1733_v9  ;;  %958 = vmatprep.subr.bf16.mxu1 %v1800_v30  ;;  %v1767_v50 = vld [vmem:[%s1985_s9] ss:$8 sps:$4 sm:$0xff]   ;;  %v1770_v51 = vld [vmem:[%s1985_s9 + $0x14] ss:$8 sps:$4 sm:$0xff]   ;;  %v1820_v54 = vld [vmem:[%s2534_s3 + $0x90] ss:$8 sps:$4 sm:$0xff]  }
  0x18   : > { %597 = vmatprep.subr.bf16.mxu0 %v1734_v10  ;;  %v1817_v52 = vld [vmem:[%s2534_s3 + $0x80] ss:$8 sps:$4 sm:$0xff]   ;;  %v1818_v53 = vld [vmem:[%s2534_s3 + $0x94] ss:$8 sps:$4 sm:$0xff]   ;;  %v1821_v55 = vld [vmem:[%s2534_s3 + $0xa4] ss:$8 sps:$4 sm:$0xff]  }
  0x19   : > { %v1772_v56 = vld [vmem:[%s1985_s9 + $0x10] ss:$8 sps:$4 sm:$0xff]   ;;  %v1773_v57 = vld [vmem:[%s1985_s9 + $0x24] ss:$8 sps:$4 sm:$0xff]   ;;  %v1823_v58 = vld [vmem:[%s2534_s3 + $0xa0] ss:$8 sps:$4 sm:$0xff]  }
  0x1a   : > { %959 = vmatpush1.bf16.msra.mxu1 %v1802_v33  ;;  %v1824_v59 = vld [vmem:[%s2534_s3 + $0xb4] ss:$8 sps:$4 sm:$0xff]   ;;  %v1826_v60 = vld [vmem:[%s2534_s3 + $0xb0] ss:$8 sps:$4 sm:$0xff]   ;;  %v1827_v61 = vld [vmem:[%s2534_s3 + $0xc4] ss:$8 sps:$4 sm:$0xff]  }
  0x1b   : > { %598 = vmatpush1.bf16.msra.mxu0 %v1736_v11  ;;  %960 = vmatprep.subr.bf16.mxu1 %v1803_v34  ;;  %v1775_v62 = vld [vmem:[%s1985_s9 + $0x20] ss:$8 sps:$4 sm:$0xff]   ;;  %v1776_v63 = vld [vmem:[%s1985_s9 + $0x34] ss:$8 sps:$4 sm:$0xff]   ;;  %v1778_v2 = vld [vmem:[%s1985_s9 + $0x30] ss:$8 sps:$4 sm:$0xff]  }
  0x1c   : > { %599 = vmatprep.subr.bf16.mxu0 %v1737_v12  ;;  %v1829_v0 = vld [vmem:[%s2534_s3 + $0xc0] ss:$8 sps:$4 sm:$0xff]   ;;  %v1830_v1 = vld [vmem:[%s2534_s3 + $0xd4] ss:$8 sps:$4 sm:$0xff]   ;;  %v1779_v3 = vld [vmem:[%s1985_s9 + $0x44] ss:$8 sps:$4 sm:$0xff]  }
  0x1d   : > { %v1781_v4 = vld [vmem:[%s1985_s9 + $0x40] ss:$8 sps:$4 sm:$0xff]   ;;  %v1782_v5 = vld [vmem:[%s1985_s9 + $0x54] ss:$8 sps:$4 sm:$0xff]   ;;  %v1784_v6 = vld [vmem:[%s1985_s9 + $0x50] ss:$8 sps:$4 sm:$0xff]  }
  0x1e   : > { %961 = vmatpush1.bf16.msra.mxu1 %v1805_v37  ;;  %v1785_v7 = vld [vmem:[%s1985_s9 + $0x64] ss:$8 sps:$4 sm:$0xff]   ;;  %v1787_v8 = vld [vmem:[%s1985_s9 + $0x60] ss:$8 sps:$4 sm:$0xff]   ;;  %v1788_v9 = vld [vmem:[%s1985_s9 + $0x74] ss:$8 sps:$4 sm:$0xff]  }
  0x1f   : > { %600 = vmatpush1.bf16.msra.mxu0 %v1739_v14  ;;  %962 = vmatprep.subr.bf16.mxu1 %v1806_v38  ;;  %v1790_v10 = vld [vmem:[%s1985_s9 + $0x70] ss:$8 sps:$4 sm:$0xff]   ;;  %v1833_v12 = vld [vmem:[%s2534_s3 + $0xe4] ss:$8 sps:$4 sm:$0xff]   ;;  %v1835_v13 = vld [vmem:[%s2534_s3 + $0xe0] ss:$8 sps:$4 sm:$0xff]  }
  0x20   : > { %601 = vmatprep.subr.bf16.mxu0 %v1740_v15  ;;  %v1832_v11 = vld [vmem:[%s2534_s3 + $0xd0] ss:$8 sps:$4 sm:$0xff]   ;;  %v1836_v14 = vld [vmem:[%s2534_s3 + $0xf4] ss:$8 sps:$4 sm:$0xff]   ;;  %v2182_v20 = vld [vmem:[%s2536_s5 + $0x24] ss:$8 sps:$4 sm:$0xff]  }
  0x21   : > { %v1838_v15 = vld [vmem:[%s2534_s3 + $0xf0] ss:$8 sps:$4 sm:$0xff]   ;;  %v2188_v21 = vld [vmem:[%s2536_s5 + $0x20] ss:$8 sps:$4 sm:$0xff]   ;;  %v2218_v26 = vld [vmem:[%s2536_s5 + $0x54] ss:$8 sps:$4 sm:$0xff]  }
  0x22   : > { %963 = vmatpush1.bf16.msra.mxu1 %v1808_v41  ;;  %v2200_v23 = vld [vmem:[%s2536_s5 + $0x30] ss:$8 sps:$4 sm:$0xff]   ;;  %v2212_v25 = vld [vmem:[%s2536_s5 + $0x40] ss:$8 sps:$4 sm:$0xff]   ;;  %v2242_v30 = vld [vmem:[%s2536_s5 + $0x74] ss:$8 sps:$4 sm:$0xff]   ;;  %v337_v41 = vlaneseq }
  0x23   : > { %602 = vmatpush1.bf16.msra.mxu0 %v1742_v16  ;;  %964 = vmatprep.subr.bf16.mxu1 %v1809_v42  ;;  %v2162_v16 = vld [vmem:[%s2536_s5] ss:$8 sps:$4 sm:$0xff]   ;;  %v2266_v34 = vld [vmem:[%s2536_s5 + $0x94] ss:$8 sps:$4 sm:$0xff]  }
  0x24   : > { %603 = vmatprep.subr.bf16.mxu0 %v1743_v17  ;;  %v1841_v17 = vld [vmem:[%s2536_s5 + $0x4] ss:$8 sps:$4 sm:$0xff]   ;;  %v2236_v29 = vld [vmem:[%s2536_s5 + $0x60] ss:$8 sps:$4 sm:$0xff]   ;;  %v2290_v38 = vld [vmem:[%s2536_s5 + $0xb4] ss:$8 sps:$4 sm:$0xff]  }
  0x25   : > { %v2260_v33 = vld [vmem:[%s2536_s5 + $0x80] ss:$8 sps:$4 sm:$0xff]  }
  0x26   : > { %965 = vmatpush1.bf16.msra.mxu1 %v1811_v44  ;;  %v2284_v37 = vld [vmem:[%s2536_s5 + $0xa0] ss:$8 sps:$4 sm:$0xff]   ;;  %v338_v44 = vshrl.u32 %v337_v41, 7 }
  0x27   : > { %604 = vmatpush1.bf16.msra.mxu0 %v1745_v18  ;;  %966 = vmatprep.subr.bf16.mxu1 %v1812_v46  ;;  %v2170_v18 = vld [vmem:[%s2536_s5 + $0x14] ss:$8 sps:$4 sm:$0xff]   ;;  %v2308_v42 = vld [vmem:[%s2536_s5 + $0xc0] ss:$8 sps:$4 sm:$0xff]  }
  0x28   : > { %605 = vmatprep.subr.bf16.mxu0 %v1746_v19  ;;  %v2176_v19 = vld [vmem:[%s2536_s5 + $0x10] ss:$8 sps:$4 sm:$0xff]   ;;  %v2323_v46 = vsub.s32 0, %v338_v44 }
  0x2a   : > { %967 = vmatpush1.bf16.msra.mxu1 %v1814_v48  ;;  %v2328_v48 = vsub.s32 1, %v338_v44 }
  0x2b   : > { %606 = vmatpush1.bf16.msra.mxu0 %v1748_v22  ;;  %968 = vmatprep.subr.bf16.mxu1 %v1815_v49  ;;  %v2194_v22 = vld [vmem:[%s2536_s5 + $0x34] ss:$8 sps:$4 sm:$0xff]  }
  0x2c   : > { %607 = vmatprep.subr.bf16.mxu0 %v1749_v24  ;;  %v2206_v24 = vld [vmem:[%s2536_s5 + $0x44] ss:$8 sps:$4 sm:$0xff]  }
  0x2e   : > { %969 = vmatpush1.bf16.msra.mxu1 %v1817_v52 }
  0x2f   : > { %608 = vmatpush1.bf16.msra.mxu0 %v1751_v27  ;;  %970 = vmatprep.subr.bf16.mxu1 %v1818_v53  ;;  %v2224_v27 = vld [vmem:[%s2536_s5 + $0x50] ss:$8 sps:$4 sm:$0xff]  }
  0x30   : > { %609 = vmatprep.subr.bf16.mxu0 %v1752_v28  ;;  %v2230_v28 = vld [vmem:[%s2536_s5 + $0x64] ss:$8 sps:$4 sm:$0xff]  }
  0x32   : > { %971 = vmatpush1.bf16.msra.mxu1 %v1820_v54 }
  0x33   : > { %610 = vmatpush1.bf16.msra.mxu0 %v1754_v31  ;;  %972 = vmatprep.subr.bf16.mxu1 %v1821_v55  ;;  %v2248_v31 = vld [vmem:[%s2536_s5 + $0x70] ss:$8 sps:$4 sm:$0xff]  }
  0x34   : > { %611 = vmatprep.subr.bf16.mxu0 %v1755_v32  ;;  %v2254_v32 = vld [vmem:[%s2536_s5 + $0x84] ss:$8 sps:$4 sm:$0xff]  }
  0x36   : > { %973 = vmatpush1.bf16.msra.mxu1 %v1823_v58 }
  0x37   : > { %612 = vmatpush1.bf16.msra.mxu0 %v1757_v35  ;;  %974 = vmatprep.subr.bf16.mxu1 %v1824_v59  ;;  %v2272_v35 = vld [vmem:[%s2536_s5 + $0x90] ss:$8 sps:$4 sm:$0xff]  }
  0x38   : > { %613 = vmatprep.subr.bf16.mxu0 %v1758_v36  ;;  %v2278_v36 = vld [vmem:[%s2536_s5 + $0xa4] ss:$8 sps:$4 sm:$0xff]  }
  0x3a   : > { %975 = vmatpush1.bf16.msra.mxu1 %v1826_v60 }
  0x3b   : > { %614 = vmatpush1.bf16.msra.mxu0 %v1760_v39  ;;  %976 = vmatprep.subr.bf16.mxu1 %v1827_v61  ;;  %v2296_v39 = vld [vmem:[%s2536_s5 + $0xb0] ss:$8 sps:$4 sm:$0xff]  }
  0x3c   : > { %615 = vmatprep.subr.bf16.mxu0 %v1761_v40  ;;  %v2302_v40 = vld [vmem:[%s2536_s5 + $0xc4] ss:$8 sps:$4 sm:$0xff]  }
  0x3e   : > { %977 = vmatpush1.bf16.msra.mxu1 %v1829_v0 }
  0x3f   : > { %616 = vmatpush1.bf16.msra.mxu0 %v1763_v43  ;;  %978 = vmatprep.subr.bf16.mxu1 %v1830_v1  ;;  %v2314_v43 = vld [vmem:[%s2536_s5 + $0xd4] ss:$8 sps:$4 sm:$0xff]  }
  0x40   : > { %617 = vmatprep.subr.bf16.mxu0 %v1764_v45  ;;  %v2320_v45 = vld [vmem:[%s2536_s5 + $0xd0] ss:$8 sps:$4 sm:$0xff]  }
  0x42   : > { %979 = vmatpush1.bf16.msra.mxu1 %v1832_v11 }
  0x43   : > { %618 = vmatpush1.bf16.msra.mxu0 %v1766_v47  ;;  %980 = vmatprep.subr.bf16.mxu1 %v1833_v12  ;;  %v335_v47 = vld [vmem:[%s2533_s2] sm:$0x3] }
  0x44   : > { %1317 = vmatprep.subr.bf16.mxu0 %v1841_v17  ;;  %v2332_v49 = vrot.slane %v335_v47, %v2323_v46 }
  0x46   : > { %620 = vmatmul.mubr.bf16.vlgmr.msra.gmra.mrb[0].mxu0 %v1767_v50  ;;  %981 = vmatpush1.bf16.msra.mxu1 %v1835_v13  ;;  %v2335_v50 = vrot.slane %v335_v47, %v2328_v48 }
  0x47   : > { %629 = vmatprep.mubr.bf16.mxu0 %v1770_v51  ;;  %982 = vmatprep.subr.bf16.mxu1 %v1836_v14 }
  0x48   : > { %1318 = vmatpush1.bf16.msra.mxu0 %v2162_v16 }
  0x49   : > { %1319 = vmatprep.subr.bf16.mxu0 %v2170_v18 }
  0x4a   : > { %983 = vmatpush1.bf16.msra.mxu1 %v1838_v15 }
  0x4b   : > { %1679 = vmatprep.subr.bf16.mxu1 %v1841_v17 }
  0x4c   : > { %1320 = vmatpush1.bf16.msra.mxu0 %v2176_v19 }
  0x4d   : > { %1321 = vmatprep.subr.bf16.mxu0 %v2182_v20 }
  0x4e   : > { %630 = vmatmul.mubr.bf16.gmra.mrb[4].mxu0 %v1772_v56 }
  0x4f   : > { %639 = vmatprep.mubr.bf16.mxu0 %v1773_v57 }
  0x50   : > { %1322 = vmatpush1.bf16.msra.mxu0 %v2188_v21 }
  0x51   : > { %1323 = vmatprep.subr.bf16.mxu0 %v2194_v22 }
  0x54   : > { %1324 = vmatpush1.bf16.msra.mxu0 %v2200_v23 }
  0x55   : > { %1325 = vmatprep.subr.bf16.mxu0 %v2206_v24 }
  0x56   : > { %640 = vmatmul.mubr.bf16.gmra.mrb[8].mxu0 %v1775_v62 }
  0x57   : > { %649 = vmatprep.mubr.bf16.mxu0 %v1776_v63 }
  0x58   : > { %1326 = vmatpush1.bf16.msra.mxu0 %v2212_v25 }
  0x59   : > { %1327 = vmatprep.subr.bf16.mxu0 %v2218_v26 }
  0x5c   : > { %1328 = vmatpush1.bf16.msra.mxu0 %v2224_v27 }
  0x5d   : > { %1329 = vmatprep.subr.bf16.mxu0 %v2230_v28 }
  0x5e   : > { %650 = vmatmul.mubr.bf16.gmra.mrb[12].mxu0 %v1778_v2 }
  0x5f   : > { %659 = vmatprep.mubr.bf16.mxu0 %v1779_v3 }
  0x60   : > { %1330 = vmatpush1.bf16.msra.mxu0 %v2236_v29 }
  0x61   : > { %1331 = vmatprep.subr.bf16.mxu0 %v2242_v30 }
  0x64   : > { %1332 = vmatpush1.bf16.msra.mxu0 %v2248_v31 }
  0x65   : > { %1333 = vmatprep.subr.bf16.mxu0 %v2254_v32 }
  0x66   : > { %660 = vmatmul.mubr.bf16.gmra.mrb[16].mxu0 %v1781_v4 }
  0x67   : > { %669 = vmatprep.mubr.bf16.mxu0 %v1782_v5 }
  0x68   : > { %1334 = vmatpush1.bf16.msra.mxu0 %v2260_v33 }
  0x69   : > { %1335 = vmatprep.subr.bf16.mxu0 %v2266_v34 }
  0x6c   : > { %1336 = vmatpush1.bf16.msra.mxu0 %v2272_v35 }
  0x6d   : > { %1337 = vmatprep.subr.bf16.mxu0 %v2278_v36 }
  0x6e   : > { %670 = vmatmul.mubr.bf16.gmra.mrb[20].mxu0 %v1784_v6 }
  0x6f   : > { %679 = vmatprep.mubr.bf16.mxu0 %v1785_v7 }
  0x70   : > { %1338 = vmatpush1.bf16.msra.mxu0 %v2284_v37 }
  0x71   : > { %1339 = vmatprep.subr.bf16.mxu0 %v2290_v38 }
  0x74   : > { %1340 = vmatpush1.bf16.msra.mxu0 %v2296_v39 }
  0x75   : > { %1341 = vmatprep.subr.bf16.mxu0 %v2302_v40 }
  0x76   : > { %680 = vmatmul.mubr.bf16.gmra.mrb[24].mxu0 %v1787_v8 }
  0x77   : > { %689 = vmatprep.mubr.bf16.mxu0 %v1788_v9 }
  0x78   : > { %1342 = vmatpush1.bf16.msra.mxu0 %v2308_v42 }
  0x79   : > { %1343 = vmatprep.subr.bf16.mxu0 %v2314_v43 }
  0x7c   : > { %1344 = vmatpush1.bf16.msra.mxu0 %v2320_v45 }
  0x7e   : > { %690 = vmatmul.mubr.bf16.gmra.mrb[28].mxu0 %v1790_v10 }
 0x119   : > { %v621_v51 = vpop.f32.mrb[0].mxu0 }
 0x11a   : > { %v622_v52 = vadd.f32 %v621_v51, %v2332_v49  ;;  %v623_v53 = vpop.f32.mrb[1].mxu0 }
 0x11b   : > { %v624_v54 = vadd.f32 %v623_v53, %v2335_v50  ;;  %v625_v55 = vpop.f32.mrb[2].mxu0 }
 0x11c   : > { %v626_v56 = vadd.f32 %v625_v55, %v2332_v49  ;;  %v627_v57 = vpop.f32.mrb[3].mxu0  ;;  %v700_v59 = vmax.f32 %v622_v52, 0.0 }
 0x11d   : > { %v628_v58 = vadd.f32 %v627_v57, %v2335_v50  ;;  %v701_v61 = vmax.f32 %v624_v54, 0.0 }
 0x11e   : > { %v702_v60 = vmax.f32 %v626_v56, 0.0 }
 0x11f   : > { %v703_v62 = vmax.f32 %v628_v58, 0.0 }
 0x120   : > { %v732_v63 = vpack.c.bf16 %v702_v60, %v700_v59 }
 0x121   : > { %v631_v0 = vpop.f32.mrb[4].mxu0  ;;  %v733_v1 = vpack.c.bf16 %v703_v62, %v701_v61 }
 0x122   : > { %v632_v2 = vadd.f32 %v631_v0, %v2332_v49  ;;  %v633_v3 = vpop.f32.mrb[5].mxu0 }
 0x123   : > { %v634_v4 = vadd.f32 %v633_v3, %v2335_v50  ;;  %v635_v5 = vpop.f32.mrb[6].mxu0  ;;  %984 = vmatprep.mubr.bf16.mxu1 %v733_v1 }
 0x124   : > { %v636_v6 = vadd.f32 %v635_v5, %v2332_v49  ;;  %v637_v7 = vpop.f32.mrb[7].mxu0  ;;  %985 = vmatmul.mubr.bf16.vlgmr.msra.gmra.mrb[0].mxu1 %v732_v63  ;;  %v704_v9 = vmax.f32 %v632_v2, 0.0 }
 0x125   : > { %v638_v8 = vadd.f32 %v637_v7, %v2335_v50  ;;  %1695 = vmatpush1.bf16.msra.mxu1 %v2162_v16  ;;  %v705_v11 = vmax.f32 %v634_v4, 0.0 }
 0x126   : > { %v706_v10 = vmax.f32 %v636_v6, 0.0  ;;  %1680 = vmatprep.subr.bf16.mxu1 %v2170_v18 }
 0x127   : > { %v707_v12 = vmax.f32 %v638_v8, 0.0 }
 0x128   : > { %v734_v13 = vpack.c.bf16 %v706_v10, %v704_v9 }
 0x129   : > { %v735_v14 = vpack.c.bf16 %v707_v12, %v705_v11  ;;  %v641_v15 = vpop.f32.mrb[8].mxu0  ;;  %1696 = vmatpush1.bf16.msra.mxu1 %v2176_v19 }
 0x12a   : > { %v642_v17 = vadd.f32 %v641_v15, %v2332_v49  ;;  %v643_v41 = vpop.f32.mrb[9].mxu0  ;;  %1681 = vmatprep.subr.bf16.mxu1 %v2182_v20 }
 0x12b   : > { %v644_v44 = vadd.f32 %v643_v41, %v2335_v50  ;;  %v645_v47 = vpop.f32.mrb[10].mxu0  ;;  %994 = vmatprep.mubr.bf16.mxu1 %v735_v14 }
 0x12c   : > { %v646_v16 = vadd.f32 %v645_v47, %v2332_v49  ;;  %v647_v51 = vpop.f32.mrb[11].mxu0  ;;  %995 = vmatmul.mubr.bf16.gmra.mrb[4].mxu1 %v734_v13  ;;  %v708_v52 = vmax.f32 %v642_v17, 0.0 }
 0x12d   : > { %v648_v18 = vadd.f32 %v647_v51, %v2335_v50  ;;  %1697 = vmatpush1.bf16.msra.mxu1 %v2188_v21  ;;  %v709_v19 = vmax.f32 %v644_v44, 0.0 }
 0x12e   : > { %v710_v53 = vmax.f32 %v646_v16, 0.0  ;;  %1682 = vmatprep.subr.bf16.mxu1 %v2194_v22 }
 0x12f   : > { %v711_v54 = vmax.f32 %v648_v18, 0.0 }
 0x130   : > { %v736_v55 = vpack.c.bf16 %v710_v53, %v708_v52 }
 0x131   : > { %v737_v20 = vpack.c.bf16 %v711_v54, %v709_v19  ;;  %v651_v56 = vpop.f32.mrb[12].mxu0  ;;  %1698 = vmatpush1.bf16.msra.mxu1 %v2200_v23 }
 0x132   : > { %v652_v57 = vadd.f32 %v651_v56, %v2332_v49  ;;  %v653_v58 = vpop.f32.mrb[13].mxu0  ;;  %1683 = vmatprep.subr.bf16.mxu1 %v2206_v24 }
 0x133   : > { %v654_v59 = vadd.f32 %v653_v58, %v2335_v50  ;;  %v655_v60 = vpop.f32.mrb[14].mxu0  ;;  %1004 = vmatprep.mubr.bf16.mxu1 %v737_v20 }
 0x134   : > { %v656_v21 = vadd.f32 %v655_v60, %v2332_v49  ;;  %v657_v61 = vpop.f32.mrb[15].mxu0  ;;  %1005 = vmatmul.mubr.bf16.gmra.mrb[8].mxu1 %v736_v55  ;;  %v712_v62 = vmax.f32 %v652_v57, 0.0 }
 0x135   : > { %v658_v22 = vadd.f32 %v657_v61, %v2335_v50  ;;  %1699 = vmatpush1.bf16.msra.mxu1 %v2212_v25  ;;  %v713_v23 = vmax.f32 %v654_v59, 0.0 }
 0x136   : > { %v714_v63 = vmax.f32 %v656_v21, 0.0  ;;  %1684 = vmatprep.subr.bf16.mxu1 %v2218_v26 }
 0x137   : > { %v715_v0 = vmax.f32 %v658_v22, 0.0 }
 0x138   : > { %v738_v1 = vpack.c.bf16 %v714_v63, %v712_v62 }
 0x139   : > { %v739_v24 = vpack.c.bf16 %v715_v0, %v713_v23  ;;  %v661_v2 = vpop.f32.mrb[16].mxu0  ;;  %1700 = vmatpush1.bf16.msra.mxu1 %v2224_v27 }
 0x13a   : > { %v662_v3 = vadd.f32 %v661_v2, %v2332_v49  ;;  %v663_v4 = vpop.f32.mrb[17].mxu0  ;;  %1685 = vmatprep.subr.bf16.mxu1 %v2230_v28 }
 0x13b   : > { %v664_v5 = vadd.f32 %v663_v4, %v2335_v50  ;;  %v665_v6 = vpop.f32.mrb[18].mxu0  ;;  %1014 = vmatprep.mubr.bf16.mxu1 %v739_v24 }
 0x13c   : > { %v666_v25 = vadd.f32 %v665_v6, %v2332_v49  ;;  %v667_v7 = vpop.f32.mrb[19].mxu0  ;;  %1015 = vmatmul.mubr.bf16.gmra.mrb[12].mxu1 %v738_v1  ;;  %v716_v8 = vmax.f32 %v662_v3, 0.0 }
 0x13d   : > { %v668_v26 = vadd.f32 %v667_v7, %v2335_v50  ;;  %1701 = vmatpush1.bf16.msra.mxu1 %v2236_v29  ;;  %v717_v27 = vmax.f32 %v664_v5, 0.0 }
 0x13e   : > { %v718_v9 = vmax.f32 %v666_v25, 0.0  ;;  %1686 = vmatprep.subr.bf16.mxu1 %v2242_v30 }
 0x13f   : > { %v719_v10 = vmax.f32 %v668_v26, 0.0 }
 0x140   : > { %v740_v11 = vpack.c.bf16 %v718_v9, %v716_v8 }
 0x141   : > { %v741_v28 = vpack.c.bf16 %v719_v10, %v717_v27  ;;  %v671_v12 = vpop.f32.mrb[20].mxu0  ;;  %1702 = vmatpush1.bf16.msra.mxu1 %v2248_v31 }
 0x142   : > { %v672_v13 = vadd.f32 %v671_v12, %v2332_v49  ;;  %v673_v14 = vpop.f32.mrb[21].mxu0  ;;  %1687 = vmatprep.subr.bf16.mxu1 %v2254_v32 }
 0x143   : > { %v674_v15 = vadd.f32 %v673_v14, %v2335_v50  ;;  %v675_v17 = vpop.f32.mrb[22].mxu0  ;;  %1024 = vmatprep.mubr.bf16.mxu1 %v741_v28 }
 0x144   : > { %v676_v29 = vadd.f32 %v675_v17, %v2332_v49  ;;  %v677_v41 = vpop.f32.mrb[23].mxu0  ;;  %1025 = vmatmul.mubr.bf16.gmra.mrb[16].mxu1 %v740_v11  ;;  %v720_v44 = vmax.f32 %v672_v13, 0.0 }
 0x145   : > { %v678_v30 = vadd.f32 %v677_v41, %v2335_v50  ;;  %1703 = vmatpush1.bf16.msra.mxu1 %v2260_v33  ;;  %v721_v31 = vmax.f32 %v674_v15, 0.0 }
 0x146   : > { %v722_v47 = vmax.f32 %v676_v29, 0.0  ;;  %1688 = vmatprep.subr.bf16.mxu1 %v2266_v34 }
 0x147   : > { %v723_v16 = vmax.f32 %v678_v30, 0.0 }
 0x148   : > { %v742_v51 = vpack.c.bf16 %v722_v47, %v720_v44 }
 0x149   : > { %v743_v32 = vpack.c.bf16 %v723_v16, %v721_v31  ;;  %v681_v18 = vpop.f32.mrb[24].mxu0  ;;  %1704 = vmatpush1.bf16.msra.mxu1 %v2272_v35 }
 0x14a   : > { %v682_v52 = vadd.f32 %v681_v18, %v2332_v49  ;;  %v683_v53 = vpop.f32.mrb[25].mxu0  ;;  %1689 = vmatprep.subr.bf16.mxu1 %v2278_v36 }
 0x14b   : > { %v684_v19 = vadd.f32 %v683_v53, %v2335_v50  ;;  %v685_v54 = vpop.f32.mrb[26].mxu0  ;;  %1034 = vmatprep.mubr.bf16.mxu1 %v743_v32 }
 0x14c   : > { %v686_v33 = vadd.f32 %v685_v54, %v2332_v49  ;;  %v687_v55 = vpop.f32.mrb[27].mxu0  ;;  %1035 = vmatmul.mubr.bf16.gmra.mrb[20].mxu1 %v742_v51  ;;  %v724_v20 = vmax.f32 %v682_v52, 0.0 }
 0x14d   : > { %v688_v34 = vadd.f32 %v687_v55, %v2335_v50  ;;  %1705 = vmatpush1.bf16.msra.mxu1 %v2284_v37  ;;  %v725_v35 = vmax.f32 %v684_v19, 0.0 }
 0x14e   : > { %v726_v56 = vmax.f32 %v686_v33, 0.0  ;;  %1690 = vmatprep.subr.bf16.mxu1 %v2290_v38 }
 0x14f   : > { %v727_v57 = vmax.f32 %v688_v34, 0.0 }
 0x150   : > { %v744_v58 = vpack.c.bf16 %v726_v56, %v724_v20 }
 0x151   : > { %v745_v36 = vpack.c.bf16 %v727_v57, %v725_v35  ;;  %v691_v59 = vpop.f32.mrb[28].mxu0  ;;  %1706 = vmatpush1.bf16.msra.mxu1 %v2296_v39 }
 0x152   : > { %v692_v60 = vadd.f32 %v691_v59, %v2332_v49  ;;  %v693_v21 = vpop.f32.mrb[29].mxu0  ;;  %1691 = vmatprep.subr.bf16.mxu1 %v2302_v40 }
 0x153   : > { %v694_v61 = vadd.f32 %v693_v21, %v2335_v50  ;;  %v695_v22 = vpop.f32.mrb[30].mxu0  ;;  %1044 = vmatprep.mubr.bf16.mxu1 %v745_v36 }
 0x154   : > { %v696_v37 = vadd.f32 %v695_v22, %v2332_v49  ;;  %v697_v62 = vpop.f32.mrb[31].mxu0  ;;  %1045 = vmatmul.mubr.bf16.gmra.mrb[24].mxu1 %v744_v58  ;;  %v728_v63 = vmax.f32 %v692_v60, 0.0  ;;  %v1883_v49 = vld [vmem:[%s2536_s5 + $0xe4] ss:$8 sps:$4 sm:$0xff]  }
 0x155   : > { %v698_v38 = vadd.f32 %v697_v62, %v2335_v50  ;;  %1707 = vmatpush1.bf16.msra.mxu1 %v2308_v42  ;;  %v729_v39 = vmax.f32 %v694_v61, 0.0  ;;  %v1881_v42 = vld [vmem:[%s2536_s5 + $0xe0] ss:$8 sps:$4 sm:$0xff]   ;;  %1345 = vmatprep.subr.bf16.mxu0 %v1883_v49 }
 0x156   : > { %v730_v23 = vmax.f32 %v696_v37, 0.0  ;;  %1692 = vmatprep.subr.bf16.mxu1 %v2314_v43  ;;  %1346 = vmatpush1.bf16.msra.mxu0 %v1881_v42  ;;  %v1886_v43 = vld [vmem:[%s2536_s5 + $0xf4] ss:$8 sps:$4 sm:$0xff]   ;;  %v780_v50 = vld [vmem:[%s2535_s4] sm:$0x3] }
 0x157   : > { %v731_v0 = vmax.f32 %v698_v38, 0.0  ;;  %1347 = vmatprep.subr.bf16.mxu0 %v1886_v43  ;;  %v2412_v24 = vrot.slane %v780_v50, %v2323_v46  ;;  %v2415_v2 = vrot.slane %v780_v50, %v2328_v48 }
 0x158   : > { %v746_v1 = vpack.c.bf16 %v730_v23, %v728_v63 }
 0x159   : > { %v747_v40 = vpack.c.bf16 %v731_v0, %v729_v39  ;;  %1708 = vmatpush1.bf16.msra.mxu1 %v2320_v45  ;;  %v1884_v45 = vld [vmem:[%s2536_s5 + $0xf0] ss:$8 sps:$4 sm:$0xff]  }
 0x15a   : > { %1693 = vmatprep.subr.bf16.mxu1 %v1883_v49  ;;  %1348 = vmatpush1.bf16.msra.mxu0 %v1884_v45 }
 0x15b   : > { %1054 = vmatprep.mubr.bf16.mxu1 %v747_v40 }
 0x15c   : > { %1055 = vmatmul.mubr.bf16.gmra.mrb[28].mxu1 %v746_v1 }
 0x15d   : > { %1709 = vmatpush1.bf16.msra.mxu1 %v1881_v42 }
 0x15e   : > { %1694 = vmatprep.subr.bf16.mxu1 %v1886_v43 }
 0x161   : > { %1710 = vmatpush1.bf16.msra.mxu1 %v1884_v45 }
 0x1f7   : > { %v986_v3 = vpop.f32.mrb[0].mxu1 }
 0x1f8   : > { %v987_v4 = vadd.f32 %v986_v3, %v2412_v24  ;;  %v988_v5 = vpop.f32.mrb[1].mxu1 }
 0x1f9   : > { %v989_v6 = vadd.f32 %v988_v5, %v2415_v2  ;;  %v990_v25 = vpop.f32.mrb[2].mxu1 }
 0x1fa   : > { %v991_v7 = vadd.f32 %v990_v25, %v2412_v24  ;;  %v992_v26 = vpop.f32.mrb[3].mxu1  ;;  %v1065_v9 = vmax.f32 %v987_v4, 0.0 }
 0x1fb   : > { %v993_v8 = vadd.f32 %v992_v26, %v2415_v2  ;;  %v1066_v10 = vmax.f32 %v989_v6, 0.0 }
 0x1fc   : > { %v1067_v27 = vmax.f32 %v991_v7, 0.0 }
 0x1fd   : > { %v1068_v11 = vmax.f32 %v993_v8, 0.0 }
 0x1fe   : > { %v1097_v28 = vpack.c.bf16 %v1067_v27, %v1065_v9 }
 0x1ff   : > { %v1098_v12 = vpack.c.bf16 %v1068_v11, %v1066_v10  ;;  %v996_v13 = vpop.f32.mrb[4].mxu1 }
 0x200   : > { %v997_v14 = vadd.f32 %v996_v13, %v2412_v24  ;;  %v998_v15 = vpop.f32.mrb[5].mxu1 }
 0x201   : > { %v999_v17 = vadd.f32 %v998_v15, %v2415_v2  ;;  %v1000_v29 = vpop.f32.mrb[6].mxu1  ;;  %1349 = vmatprep.mubr.bf16.mxu0 %v1098_v12 }
 0x202   : > { %v1001_v41 = vadd.f32 %v1000_v29, %v2412_v24  ;;  %v1002_v30 = vpop.f32.mrb[7].mxu1  ;;  %1350 = vmatmul.mubr.bf16.vlgmr.msra.gmra.mrb[32].mxu0 %v1097_v28  ;;  %v1069_v47 = vmax.f32 %v997_v14, 0.0 }
 0x203   : > { %v1003_v44 = vadd.f32 %v1002_v30, %v2415_v2  ;;  %v1070_v16 = vmax.f32 %v999_v17, 0.0 }
 0x204   : > { %v1071_v31 = vmax.f32 %v1001_v41, 0.0 }
 0x205   : > { %v1072_v51 = vmax.f32 %v1003_v44, 0.0 }
 0x206   : > { %v1099_v32 = vpack.c.bf16 %v1071_v31, %v1069_v47 }
 0x207   : > { %v1100_v18 = vpack.c.bf16 %v1072_v51, %v1070_v16  ;;  %v1006_v52 = vpop.f32.mrb[8].mxu1 }
 0x208   : > { %v1007_v53 = vadd.f32 %v1006_v52, %v2412_v24  ;;  %v1008_v19 = vpop.f32.mrb[9].mxu1 }
 0x209   : > { %v1009_v54 = vadd.f32 %v1008_v19, %v2415_v2  ;;  %v1010_v33 = vpop.f32.mrb[10].mxu1  ;;  %1359 = vmatprep.mubr.bf16.mxu0 %v1100_v18 }
 0x20a   : > { %v1011_v55 = vadd.f32 %v1010_v33, %v2412_v24  ;;  %v1012_v34 = vpop.f32.mrb[11].mxu1  ;;  %1360 = vmatmul.mubr.bf16.gmra.mrb[36].mxu0 %v1099_v32  ;;  %v1073_v56 = vmax.f32 %v1007_v53, 0.0 }
 0x20b   : > { %v1013_v20 = vadd.f32 %v1012_v34, %v2415_v2  ;;  %v1074_v57 = vmax.f32 %v1009_v54, 0.0 }
 0x20c   : > { %v1075_v35 = vmax.f32 %v1011_v55, 0.0 }
 0x20d   : > { %v1076_v58 = vmax.f32 %v1013_v20, 0.0 }
 0x20e   : > { %v1101_v36 = vpack.c.bf16 %v1075_v35, %v1073_v56 }
 0x20f   : > { %v1102_v59 = vpack.c.bf16 %v1076_v58, %v1074_v57  ;;  %v1016_v60 = vpop.f32.mrb[12].mxu1 }
 0x210   : > { %v1017_v21 = vadd.f32 %v1016_v60, %v2412_v24  ;;  %v1018_v61 = vpop.f32.mrb[13].mxu1 }
 0x211   : > { %v1019_v22 = vadd.f32 %v1018_v61, %v2415_v2  ;;  %v1020_v37 = vpop.f32.mrb[14].mxu1  ;;  %1369 = vmatprep.mubr.bf16.mxu0 %v1102_v59 }
 0x212   : > { %v1021_v62 = vadd.f32 %v1020_v37, %v2412_v24  ;;  %v1022_v38 = vpop.f32.mrb[15].mxu1  ;;  %1370 = vmatmul.mubr.bf16.gmra.mrb[40].mxu0 %v1101_v36  ;;  %v1077_v23 = vmax.f32 %v1017_v21, 0.0 }
 0x213   : > { %v1023_v63 = vadd.f32 %v1022_v38, %v2415_v2  ;;  %v1078_v0 = vmax.f32 %v1019_v22, 0.0 }
 0x214   : > { %v1079_v39 = vmax.f32 %v1021_v62, 0.0 }
 0x215   : > { %v1080_v1 = vmax.f32 %v1023_v63, 0.0 }
 0x216   : > { %v1103_v40 = vpack.c.bf16 %v1079_v39, %v1077_v23 }
 0x217   : > { %v1104_v49 = vpack.c.bf16 %v1080_v1, %v1078_v0  ;;  %v1026_v42 = vpop.f32.mrb[16].mxu1  ;;  %v1145_v0 = vld [vmem:[%s2537_s6] sm:$0x3] }
 0x218   : > { %v1027_v43 = vadd.f32 %v1026_v42, %v2412_v24  ;;  %v1028_v45 = vpop.f32.mrb[17].mxu1  ;;  %v2453_v1 = vrot.slane %v1145_v0, %v2323_v46 }
 0x219   : > { %v1029_v50 = vadd.f32 %v1028_v45, %v2415_v2  ;;  %v1030_v3 = vpop.f32.mrb[18].mxu1  ;;  %1379 = vmatprep.mubr.bf16.mxu0 %v1104_v49 }
 0x21a   : > { %v1031_v4 = vadd.f32 %v1030_v3, %v2412_v24  ;;  %v1032_v5 = vpop.f32.mrb[19].mxu1  ;;  %1380 = vmatmul.mubr.bf16.gmra.mrb[44].mxu0 %v1103_v40  ;;  %v1081_v25 = vmax.f32 %v1027_v43, 0.0 }
 0x21b   : > { %v1033_v6 = vadd.f32 %v1032_v5, %v2415_v2  ;;  %v1082_v26 = vmax.f32 %v1029_v50, 0.0 }
 0x21c   : > { %v1083_v7 = vmax.f32 %v1031_v4, 0.0 }
 0x21d   : > { %v1084_v8 = vmax.f32 %v1033_v6, 0.0 }
 0x21e   : > { %v1105_v9 = vpack.c.bf16 %v1083_v7, %v1081_v25 }
 0x21f   : > { %v1106_v27 = vpack.c.bf16 %v1084_v8, %v1082_v26  ;;  %v1036_v10 = vpop.f32.mrb[20].mxu1 }
 0x220   : > { %v1037_v11 = vadd.f32 %v1036_v10, %v2412_v24  ;;  %v1038_v28 = vpop.f32.mrb[21].mxu1 }
 0x221   : > { %v1039_v12 = vadd.f32 %v1038_v28, %v2415_v2  ;;  %v1040_v13 = vpop.f32.mrb[22].mxu1  ;;  %1389 = vmatprep.mubr.bf16.mxu1 %v1106_v27 }
 0x222   : > { %v1041_v14 = vadd.f32 %v1040_v13, %v2412_v24  ;;  %v1042_v15 = vpop.f32.mrb[23].mxu1  ;;  %1390 = vmatmul.mubr.bf16.vlgmr.msra.gmra.mrb[32].mxu1 %v1105_v9  ;;  %v1085_v29 = vmax.f32 %v1037_v11, 0.0 }
 0x223   : > { %v1043_v17 = vadd.f32 %v1042_v15, %v2415_v2  ;;  %v1086_v30 = vmax.f32 %v1039_v12, 0.0 }
 0x224   : > { %v1087_v41 = vmax.f32 %v1041_v14, 0.0 }
 0x225   : > { %v1088_v44 = vmax.f32 %v1043_v17, 0.0 }
 0x226   : > { %v1107_v47 = vpack.c.bf16 %v1087_v41, %v1085_v29 }
 0x227   : > { %v1108_v31 = vpack.c.bf16 %v1088_v44, %v1086_v30  ;;  %v1046_v16 = vpop.f32.mrb[24].mxu1 }
 0x228   : > { %v1047_v51 = vadd.f32 %v1046_v16, %v2412_v24  ;;  %v1048_v32 = vpop.f32.mrb[25].mxu1 }
 0x229   : > { %v1049_v18 = vadd.f32 %v1048_v32, %v2415_v2  ;;  %v1050_v52 = vpop.f32.mrb[26].mxu1  ;;  %1399 = vmatprep.mubr.bf16.mxu1 %v1108_v31 }
 0x22a   : > { %v1051_v53 = vadd.f32 %v1050_v52, %v2412_v24  ;;  %v1052_v19 = vpop.f32.mrb[27].mxu1  ;;  %1400 = vmatmul.mubr.bf16.gmra.mrb[36].mxu1 %v1107_v47  ;;  %v1089_v33 = vmax.f32 %v1047_v51, 0.0 }
 0x22b   : > { %v1053_v54 = vadd.f32 %v1052_v19, %v2415_v2  ;;  %v1090_v34 = vmax.f32 %v1049_v18, 0.0 }
 0x22c   : > { %v1091_v55 = vmax.f32 %v1051_v53, 0.0 }
 0x22d   : > { %v1092_v20 = vmax.f32 %v1053_v54, 0.0 }
 0x22e   : > { %v1109_v56 = vpack.c.bf16 %v1091_v55, %v1089_v33 }
 0x22f   : > { %v1110_v35 = vpack.c.bf16 %v1092_v20, %v1090_v34  ;;  %v1056_v57 = vpop.f32.mrb[28].mxu1 }
 0x230   : > { %v1057_v58 = vadd.f32 %v1056_v57, %v2412_v24  ;;  %v1058_v36 = vpop.f32.mrb[29].mxu1 }
 0x231   : > { %v1059_v59 = vadd.f32 %v1058_v36, %v2415_v2  ;;  %v1060_v60 = vpop.f32.mrb[30].mxu1  ;;  %1409 = vmatprep.mubr.bf16.mxu1 %v1110_v35 }
 0x232   : > { %v1061_v21 = vadd.f32 %v1060_v60, %v2412_v24  ;;  %v1062_v61 = vpop.f32.mrb[31].mxu1  ;;  %1410 = vmatmul.mubr.bf16.gmra.mrb[40].mxu1 %v1109_v56  ;;  %v1093_v37 = vmax.f32 %v1057_v58, 0.0  ;;  %v2456_v24 = vrot.slane %v1145_v0, %v2328_v48 }
 0x233   : > { %v1063_v22 = vadd.f32 %v1062_v61, %v2415_v2  ;;  %v1094_v38 = vmax.f32 %v1059_v59, 0.0 }
 0x234   : > { %v1095_v62 = vmax.f32 %v1061_v21, 0.0 }
 0x235   : > { %v1096_v63 = vmax.f32 %v1063_v22, 0.0 }
 0x236   : > { %v1111_v23 = vpack.c.bf16 %v1095_v62, %v1093_v37 }
 0x237   : > { %v1112_v39 = vpack.c.bf16 %v1096_v63, %v1094_v38 }
 0x239   : > { %1419 = vmatprep.mubr.bf16.mxu1 %v1112_v39 }
 0x23a   : > { %1420 = vmatmul.mubr.bf16.gmra.mrb[44].mxu1 %v1111_v23 }
 0x2d5   : > { %v1351_v2 = vpop.f32.mrb[32].mxu0 }
 0x2d6   : > { %v1352_v40 = vadd.f32 %v1351_v2, %v2453_v1  ;;  %v1353_v49 = vpop.f32.mrb[33].mxu0 }
 0x2d7   : > { %v1354_v46 = vadd.f32 %v1353_v49, %v2456_v24  ;;  %v1355_v42 = vpop.f32.mrb[34].mxu0 }
 0x2d8   : > { %v1430_v43 = vmax.f32 %v1352_v40, 0.0  ;;  %v1356_v48 = vadd.f32 %v1355_v42, %v2453_v1  ;;  %v1357_v45 = vpop.f32.mrb[35].mxu0 }
 0x2d9   : > { %v1431_v50 = vmax.f32 %v1354_v46, 0.0  ;;  %v1358_v3 = vadd.f32 %v1357_v45, %v2456_v24 }
 0x2da   : > { %1462 = vst [vmem:[%s2463_s25] sm:$0xff] %v1430_v43  ;;  %v1432_v4 = vmax.f32 %v1356_v48, 0.0 }
 0x2db   : > { %1463 = vst [vmem:[%s2463_s25 + $0x8] sm:$0xff] %v1431_v50  ;;  %v1433_v5 = vmax.f32 %v1358_v3, 0.0 }
 0x2dc   : > { %1464 = vst [vmem:[%s2463_s25 + $0x10] sm:$0xff] %v1432_v4 }
 0x2dd   : > { %1465 = vst [vmem:[%s2463_s25 + $0x18] sm:$0xff] %v1433_v5  ;;  %v1361_v6 = vpop.f32.mrb[36].mxu0 }
 0x2de   : > { %v1362_v25 = vadd.f32 %v1361_v6, %v2453_v1  ;;  %v1363_v7 = vpop.f32.mrb[37].mxu0 }
 0x2df   : > { %v1364_v26 = vadd.f32 %v1363_v7, %v2456_v24  ;;  %v1365_v8 = vpop.f32.mrb[38].mxu0 }
 0x2e0   : > { %v1434_v9 = vmax.f32 %v1362_v25, 0.0  ;;  %v1366_v27 = vadd.f32 %v1365_v8, %v2453_v1  ;;  %v1367_v10 = vpop.f32.mrb[39].mxu0 }
 0x2e1   : > { %v1435_v11 = vmax.f32 %v1364_v26, 0.0  ;;  %v1368_v28 = vadd.f32 %v1367_v10, %v2456_v24 }
 0x2e2   : > { %1466 = vst [vmem:[%s2463_s25 + $0x20] sm:$0xff] %v1434_v9  ;;  %v1436_v12 = vmax.f32 %v1366_v27, 0.0 }
 0x2e3   : > { %1467 = vst [vmem:[%s2463_s25 + $0x28] sm:$0xff] %v1435_v11  ;;  %v1437_v13 = vmax.f32 %v1368_v28, 0.0 }
 0x2e4   : > { %1468 = vst [vmem:[%s2463_s25 + $0x30] sm:$0xff] %v1436_v12 }
 0x2e5   : > { %1469 = vst [vmem:[%s2463_s25 + $0x38] sm:$0xff] %v1437_v13  ;;  %v1371_v14 = vpop.f32.mrb[40].mxu0 }
 0x2e6   : > { %v1372_v15 = vadd.f32 %v1371_v14, %v2453_v1  ;;  %v1373_v17 = vpop.f32.mrb[41].mxu0 }
 0x2e7   : > { %v1374_v29 = vadd.f32 %v1373_v17, %v2456_v24  ;;  %v1375_v41 = vpop.f32.mrb[42].mxu0 }
 0x2e8   : > { %v1438_v30 = vmax.f32 %v1372_v15, 0.0  ;;  %v1376_v44 = vadd.f32 %v1375_v41, %v2453_v1  ;;  %v1377_v47 = vpop.f32.mrb[43].mxu0 }
 0x2e9   : > { %v1439_v31 = vmax.f32 %v1374_v29, 0.0  ;;  %v1378_v16 = vadd.f32 %v1377_v47, %v2456_v24 }
 0x2ea   : > { %1470 = vst [vmem:[%s2463_s25 + $0x40] sm:$0xff] %v1438_v30  ;;  %v1440_v51 = vmax.f32 %v1376_v44, 0.0 }
 0x2eb   : > { %1471 = vst [vmem:[%s2463_s25 + $0x48] sm:$0xff] %v1439_v31  ;;  %v1441_v32 = vmax.f32 %v1378_v16, 0.0 }
 0x2ec   : > { %1472 = vst [vmem:[%s2463_s25 + $0x50] sm:$0xff] %v1440_v51 }
 0x2ed   : > { %1473 = vst [vmem:[%s2463_s25 + $0x58] sm:$0xff] %v1441_v32  ;;  %v1381_v18 = vpop.f32.mrb[44].mxu0 }
 0x2ee   : > { %v1382_v52 = vadd.f32 %v1381_v18, %v2453_v1  ;;  %v1383_v53 = vpop.f32.mrb[45].mxu0 }
 0x2ef   : > { %v1384_v19 = vadd.f32 %v1383_v53, %v2456_v24  ;;  %v1385_v54 = vpop.f32.mrb[46].mxu0 }
 0x2f0   : > { %v1442_v33 = vmax.f32 %v1382_v52, 0.0  ;;  %v1386_v55 = vadd.f32 %v1385_v54, %v2453_v1  ;;  %v1387_v34 = vpop.f32.mrb[47].mxu0 }
 0x2f1   : > { %v1443_v20 = vmax.f32 %v1384_v19, 0.0  ;;  %v1388_v56 = vadd.f32 %v1387_v34, %v2456_v24 }
 0x2f2   : > { %1474 = vst [vmem:[%s2463_s25 + $0x60] sm:$0xff] %v1442_v33  ;;  %v1444_v35 = vmax.f32 %v1386_v55, 0.0 }
 0x2f3   : > { %1475 = vst [vmem:[%s2463_s25 + $0x68] sm:$0xff] %v1443_v20  ;;  %v1445_v57 = vmax.f32 %v1388_v56, 0.0 }
 0x2f4   : > { %1476 = vst [vmem:[%s2463_s25 + $0x70] sm:$0xff] %v1444_v35 }
 0x2f5   : > { %1477 = vst [vmem:[%s2463_s25 + $0x78] sm:$0xff] %v1445_v57  ;;  %v1391_v58 = vpop.f32.mrb[32].mxu1 }
 0x2f6   : > { %v1392_v36 = vadd.f32 %v1391_v58, %v2453_v1  ;;  %v1393_v59 = vpop.f32.mrb[33].mxu1 }
 0x2f7   : > { %v1394_v60 = vadd.f32 %v1393_v59, %v2456_v24  ;;  %v1395_v21 = vpop.f32.mrb[34].mxu1 }
 0x2f8   : > { %v1446_v61 = vmax.f32 %v1392_v36, 0.0  ;;  %v1396_v22 = vadd.f32 %v1395_v21, %v2453_v1  ;;  %v1397_v37 = vpop.f32.mrb[35].mxu1 }
 0x2f9   : > { %v1447_v62 = vmax.f32 %v1394_v60, 0.0  ;;  %v1398_v38 = vadd.f32 %v1397_v37, %v2456_v24 }
 0x2fa   : > { %1478 = vst [vmem:[%s2463_s25 + $0x80] sm:$0xff] %v1446_v61  ;;  %v1448_v63 = vmax.f32 %v1396_v22, 0.0 }
 0x2fb   : > { %1479 = vst [vmem:[%s2463_s25 + $0x88] sm:$0xff] %v1447_v62  ;;  %v1449_v23 = vmax.f32 %v1398_v38, 0.0 }
 0x2fc   : > { %1480 = vst [vmem:[%s2463_s25 + $0x90] sm:$0xff] %v1448_v63 }
 0x2fd   : > { %1481 = vst [vmem:[%s2463_s25 + $0x98] sm:$0xff] %v1449_v23  ;;  %v1401_v39 = vpop.f32.mrb[36].mxu1 }
 0x2fe   : > { %v1402_v0 = vadd.f32 %v1401_v39, %v2453_v1  ;;  %v1403_v2 = vpop.f32.mrb[37].mxu1 }
 0x2ff   : > { %v1404_v40 = vadd.f32 %v1403_v2, %v2456_v24  ;;  %v1405_v49 = vpop.f32.mrb[38].mxu1 }
 0x300   : > { %v1450_v46 = vmax.f32 %v1402_v0, 0.0  ;;  %v1406_v42 = vadd.f32 %v1405_v49, %v2453_v1  ;;  %v1407_v43 = vpop.f32.mrb[39].mxu1 }
 0x301   : > { %v1451_v48 = vmax.f32 %v1404_v40, 0.0  ;;  %v1408_v45 = vadd.f32 %v1407_v43, %v2456_v24 }
 0x302   : > { %1482 = vst [vmem:[%s2463_s25 + $0xa0] sm:$0xff] %v1450_v46  ;;  %v1452_v50 = vmax.f32 %v1406_v42, 0.0 }
 0x303   : > { %1483 = vst [vmem:[%s2463_s25 + $0xa8] sm:$0xff] %v1451_v48  ;;  %v1453_v3 = vmax.f32 %v1408_v45, 0.0 }
 0x304   : > { %1484 = vst [vmem:[%s2463_s25 + $0xb0] sm:$0xff] %v1452_v50 }
 0x305   : > { %1485 = vst [vmem:[%s2463_s25 + $0xb8] sm:$0xff] %v1453_v3  ;;  %v1411_v4 = vpop.f32.mrb[40].mxu1 }
 0x306   : > { %v1412_v5 = vadd.f32 %v1411_v4, %v2453_v1  ;;  %v1413_v6 = vpop.f32.mrb[41].mxu1 }
 0x307   : > { %v1414_v25 = vadd.f32 %v1413_v6, %v2456_v24  ;;  %v1415_v7 = vpop.f32.mrb[42].mxu1 }
 0x308   : > { %v1454_v26 = vmax.f32 %v1412_v5, 0.0  ;;  %v1416_v8 = vadd.f32 %v1415_v7, %v2453_v1  ;;  %v1417_v9 = vpop.f32.mrb[43].mxu1 }
 0x309   : > { %v1455_v27 = vmax.f32 %v1414_v25, 0.0  ;;  %v1418_v10 = vadd.f32 %v1417_v9, %v2456_v24 }
 0x30a   : > { %1486 = vst [vmem:[%s2463_s25 + $0xc0] sm:$0xff] %v1454_v26  ;;  %v1456_v11 = vmax.f32 %v1416_v8, 0.0 }
 0x30b   : > { %1487 = vst [vmem:[%s2463_s25 + $0xc8] sm:$0xff] %v1455_v27  ;;  %v1457_v28 = vmax.f32 %v1418_v10, 0.0 }
 0x30c   : > { %1488 = vst [vmem:[%s2463_s25 + $0xd0] sm:$0xff] %v1456_v11 }
 0x30d   : > { %1489 = vst [vmem:[%s2463_s25 + $0xd8] sm:$0xff] %v1457_v28  ;;  %v1421_v12 = vpop.f32.mrb[44].mxu1 }
 0x30e   : > { %v1422_v13 = vadd.f32 %v1421_v12, %v2453_v1  ;;  %v1423_v14 = vpop.f32.mrb[45].mxu1 }
 0x30f   : > { %v1424_v15 = vadd.f32 %v1423_v14, %v2456_v24  ;;  %v1425_v17 = vpop.f32.mrb[46].mxu1 }
 0x310   : > { %v1458_v29 = vmax.f32 %v1422_v13, 0.0  ;;  %v1426_v41 = vadd.f32 %v1425_v17, %v2453_v1  ;;  %v1427_v30 = vpop.f32.mrb[47].mxu1 }
 0x311   : > { %v1459_v44 = vmax.f32 %v1424_v15, 0.0  ;;  %v1428_v47 = vadd.f32 %v1427_v30, %v2456_v24 }
 0x312   : > { %1490 = vst [vmem:[%s2463_s25 + $0xe0] sm:$0xff] %v1458_v29  ;;  %v1460_v31 = vmax.f32 %v1426_v41, 0.0 }
 0x313   : > { %1491 = vst [vmem:[%s2463_s25 + $0xe8] sm:$0xff] %v1459_v44  ;;  %v1461_v16 = vmax.f32 %v1428_v47, 0.0 }
 0x314   : > { %1492 = vst [vmem:[%s2463_s25 + $0xf0] sm:$0xff] %v1460_v31 }
 0x315   : > { %1493 = vst [vmem:[%s2463_s25 + $0xf8] sm:$0xff] %v1461_v16 }
 0x316 PF: > { %s17_s24 = sadd.s32 1, %s1893_s24  }
 0x317   : > { %p14_p4 = scmp.ge.s32.totalorder %s17_s24, 4  }
 0x319   :  { %16 = sbr.rel (!%p14_p4) target bundleno = 1 (0x1), region = 78 }

</bundles_post_ra>
